<compile_context>
chip_gen: v7x
topology: tpu7x:2x2x1
jax: 0.10.0
libtpu: 0.0.40
codegen_flags: <defaults>
</compile_context>

<pallas_src>
import jax
import jax.numpy as jnp
from jax import lax
from jax.experimental import pallas as pl
from jax.experimental.pallas import tpu as pltpu

NUM_TRANSFORMS = 2        # len(self.transforms)
DIM = 32                  # 'dim'
HIDDEN = 32               # hidden width of each transform's MLP
LANE = 128                # TPU lane width (weight output dim stays lane-dense)
MXU_DTYPE = jnp.bfloat16  # MXU operand dtype (f32 accumulate / f32 elementwise)


def neural_flow_kernel(xa_ref, w1_ref, w2_ref, o_ref):
    """One batch tile: apply all transforms sequentially.

    xa_ref: (TB, D+2) f32 augmented input [x | t | 1]
    w1_ref: (L, D+2, LANE) bf16, rows = [W1x; w1t; b1], cols >= H are zero
    w2_ref: (L, H+1, LANE) bf16, rows = [W2; b2],       cols >= D are zero
    o_ref:  (TB, D)
    """
    num_layers = w1_ref.shape[0]
    tb, aug = xa_ref.shape          # aug = D + 2
    d = o_ref.shape[1]              # D
    h_aug = w2_ref.shape[1]         # H + 1
    hidden = h_aug - 1              # H

    a = xa_ref[...]                 # (TB, D+2) f32; lanes d, d+1 hold [t, 1]
    t = a[:, d:d + 1]               # (TB, 1)
    # Hoisted out of the layer loop (JAX does not CSE broadcast_in_dim):
    phi = jnp.broadcast_to(jnp.tanh(t), (tb, aug))           # time gate, phi(0)=0
    ones_col = (lax.broadcasted_iota(jnp.int32, (tb, h_aug), 1) == hidden
                ).astype(jnp.float32)                         # 1.0 at lane H only

    for l in range(num_layers):     # static unroll, L is tiny
        # [x | t | 1] @ [W1x; w1t; b1]  ==  x@W1x + t*w1t + b1   (bf16 MXU, f32 acc)
        h = jnp.tanh(jnp.dot(a.astype(w1_ref.dtype), w1_ref[l],
                             preferred_element_type=jnp.float32))  # (TB, LANE), cols >= H are 0
        h = h[:, :h_aug] + ones_col                                # (TB, H+1) = [tanh(.) | 1]
        # [h | 1] @ [W2; b2]  ==  h@W2 + b2
        g = jnp.tanh(jnp.dot(h.astype(w2_ref.dtype), w2_ref[l],
                             preferred_element_type=jnp.float32))  # (TB, LANE), cols >= D are 0
        # Residual update; the t and ones lanes of `a` are preserved because the
        # corresponding columns of g are exactly zero (zero weight cols, tanh(0)=0).
        a = a + phi * g[:, :aug]

    o_ref[...] = a[:, :d].astype(o_ref.dtype)


def prepare_params(params, mxu_dtype=MXU_DTYPE, lane=LANE):
    """One-time packing (outside the kernel).

    Folds w1t/b1 into extra contracting rows of W1 and b2 into an extra row of
    W2 (consumed by the [x | t | 1] augmented input and a ones column appended
    to the hidden activation), casts MXU operands to bf16, and keeps the
    contracting dims at their true D+2 / H+1 sizes (not 128-padded).
    """
    L, D, H = params["w1x"].shape
    w1 = jnp.zeros((L, D + 2, lane), mxu_dtype)
    w1 = w1.at[:, :D, :H].set(params["w1x"].astype(mxu_dtype))
    w1 = w1.at[:, D, :H].set(params["w1t"][:, 0, :].astype(mxu_dtype))
    w1 = w1.at[:, D + 1, :H].set(params["b1"][:, 0, :].astype(mxu_dtype))
    w2 = jnp.zeros((L, H + 1, lane), mxu_dtype)
    w2 = w2.at[:, :H, :D].set(params["w2"].astype(mxu_dtype))
    w2 = w2.at[:, H, :D].set(params["b2"][:, 0, :].astype(mxu_dtype))
    return {"w1": w1, "w2": w2, "dim": D, "hidden": H}


def _num_tensorcores():
    """Best-effort TensorCore count of the attached chip (v7x has 2 per chip)."""
    try:
        dev = jax.devices()[0]
        n = getattr(dev, "num_cores", None)
        if n is not None:
            return max(1, int(n))
        kind = str(getattr(dev, "device_kind", "")).lower()
        return 2 if "v7" in kind else 1
    except Exception:
        return 1


def _round_up(n, m):
    return ((n + m - 1) // m) * m


def _choose_tiling(B, num_cores):
    """Return (padded batch, batch tile).

    Single grid step for small batches (removes ~0.35us/step fixed overhead);
    >= 2 steps on multi-TensorCore chips so the "parallel" axis shards across
    cores; >= 256-tall tiles for large B (pad the batch instead of degenerating
    to tiny tiles for awkward batch sizes)."""
    if B > 512:
        tile_b = 256
        return _round_up(B, tile_b), tile_b
    if num_cores > 1 and B >= 128:
        b_pad = _round_up(B, 16)
        return b_pad, b_pad // 2
    b_pad = _round_up(B, 8)
    return b_pad, b_pad


def neural_flow_forward(x, t, packed):
    """x: [..., D], t: [..., 1].  packed: output of prepare_params."""
    D = packed["dim"]
    lead = x.shape[:-1]
    x2 = x.reshape(-1, D).astype(jnp.float32)
    t2 = t.reshape(-1, 1).astype(jnp.float32)
    B = x2.shape[0]

    # Augmented input [x | t | 1]: a single input stream that feeds the folded
    # w1t / b1 / b2 rows of the packed weights (no separate t DMA, no per-layer
    # broadcasts inside the kernel).
    xa = jnp.concatenate([x2, t2, jnp.ones((B, 1), jnp.float32)], axis=-1)

    b_pad, tile_b = _choose_tiling(B, _num_tensorcores())
    if b_pad != B:
        xa = jnp.pad(xa, ((0, b_pad - B), (0, 0)))   # zero rows: t=0 -> identity

    L, aug, lane = packed["w1"].shape
    h_aug = packed["w2"].shape[1]

    out = pl.pallas_call(
        neural_flow_kernel,
        out_shape=jax.ShapeDtypeStruct((b_pad, D), x.dtype),
        grid_spec=pltpu.PrefetchScalarGridSpec(
            num_scalar_prefetch=0,
            grid=(b_pad // tile_b,),
            in_specs=[
                pl.BlockSpec((tile_b, aug), lambda i: (i, 0)),       # [x | t | 1]
                pl.BlockSpec((L, aug, lane), lambda i: (0, 0, 0)),   # W1 packed (bf16)
                pl.BlockSpec((L, h_aug, lane), lambda i: (0, 0, 0)), # W2 packed (bf16)
            ],
            out_specs=pl.BlockSpec((tile_b, D), lambda i: (i, 0)),   # true-D-wide output
        ),
        compiler_params=pltpu.CompilerParams(
            dimension_semantics=("parallel",)),
    )(xa, packed["w1"], packed["w2"])

    if b_pad != B:
        out = out[:B]
    return out.reshape(*lead, D)


def init_params(key, num_transforms=NUM_TRANSFORMS, dim=DIM, hidden=HIDDEN):
    """Deterministic synthetic weights (the module's __init__ holds the transforms)."""
    k1, k2, k3 = jax.random.split(key, 3)
    scale_in = 1.0 / jnp.sqrt(dim + 1.0)
    scale_hid = 1.0 / jnp.sqrt(float(hidden))
    w1 = jax.random.normal(k1, (num_transforms, dim + 1, hidden),
                           jnp.float32) * scale_in
    w2 = jax.random.normal(k2, (num_transforms, hidden, dim),
                           jnp.float32) * scale_hid
    b1 = jax.random.normal(k3, (num_transforms, 1, hidden), jnp.float32) * 0.01
    b2 = jnp.zeros((num_transforms, 1, dim), jnp.float32)
    return {
        "w1x": w1[:, :dim, :],                  # (L, D, H)
        "w1t": w1[:, dim:dim + 1, :],           # (L, 1, H)
        "b1": b1,                               # (L, 1, H)
        "w2": w2,                               # (L, H, D)
        "b2": b2,                               # (L, 1, D)
    }


def neural_flow_reference(x, t, params, mxu_dtype=jnp.float32):
    """Pure-JAX reference in the same augmented form; mxu_dtype mirrors the
    kernel's matmul-operand dtype (bf16 -> tight check, f32 -> module semantics)."""
    phi = jnp.tanh(t)
    ones = jnp.ones_like(t)
    for l in range(params["w1x"].shape[0]):
        xa = jnp.concatenate([x, t, ones], axis=-1)
        w1 = jnp.concatenate(
            [params["w1x"][l], params["w1t"][l], params["b1"][l]], axis=0)
        h = jnp.tanh(jnp.dot(xa.astype(mxu_dtype), w1.astype(mxu_dtype),
                             preferred_element_type=jnp.float32))
        ha = jnp.concatenate([h, ones], axis=-1)
        w2 = jnp.concatenate([params["w2"][l], params["b2"][l]], axis=0)
        g = jnp.tanh(jnp.dot(ha.astype(mxu_dtype), w2.astype(mxu_dtype),
                             preferred_element_type=jnp.float32))
        x = x + phi * g
    return x


if __name__ == "__main__":
    key = jax.random.PRNGKey(0)
    kx, kt, kp = jax.random.split(key, 3)

    x = jax.random.normal(kx, (8, 8, DIM), jnp.float32)    # [..., dim]
    t = jax.random.uniform(kt, (8, 8, 1), jnp.float32)     # [..., 1]
    params = init_params(kp)
    packed = prepare_params(params)

    out = jax.block_until_ready(neural_flow_forward(x, t, packed))
    assert out.shape == x.shape and out.dtype == x.dtype

    # Exact-path correctness: reference with the same bf16 MXU operands.
    ref_bf16 = neural_flow_reference(x, t, params, mxu_dtype=MXU_DTYPE)
    assert jnp.allclose(out, ref_bf16, atol=1e-5, rtol=1e-5)
    # Coarse check against the full-f32 module semantics (bf16 operand rounding only).
    ref_f32 = neural_flow_reference(x, t, params, mxu_dtype=jnp.float32)
    assert jnp.allclose(out, ref_f32, atol=1e-1)
    # Initial-condition contract of NeuralFlow transforms: F(x, t=0) = x (exact).
    out_t0 = jax.block_until_ready(
        neural_flow_forward(x, jnp.zeros_like(t), packed))
    assert jnp.allclose(out_t0, x, atol=1e-6)

    print("KERNEL_OK")
</pallas_src>

<mosaic_0001>
module attributes {stable_mosaic.version = 11 : i64} {
  func.func @neural_flow_kernel(%arg0: i32, %arg1: memref<64x34xf32, #tpu.memory_space<vmem>>, %arg2: memref<2x34x128xbf16, #tpu.memory_space<vmem>>, %arg3: memref<2x33x128xbf16, #tpu.memory_space<vmem>>, %arg4: memref<64x32xf32, #tpu.memory_space<vmem>>) attributes {dimension_semantics = [#tpu.dimension_semantics<parallel>], iteration_bounds = array<i64: 1>, scalar_prefetch = 0 : i64, scratch_operands = 0 : i64, tpu.core_type = #tpu.core_type<tc>, window_params = [{transform_indices = @transform_0, window_bounds = array<i64: 64, 34>}, {pipeline_mode = #tpu.pipeline_mode<synchronous>, transform_indices = @transform_1, window_bounds = array<i64: 2, 34, 128>}, {pipeline_mode = #tpu.pipeline_mode<synchronous>, transform_indices = @transform_2, window_bounds = array<i64: 2, 33, 128>}, {transform_indices = @transform_3, window_bounds = array<i64: 64, 32>}]} {
    %c0 = arith.constant 0 : index
    %c0_0 = arith.constant 0 : index
    %0 = vector.load %arg1[%c0, %c0_0] : memref<64x34xf32, #tpu.memory_space<vmem>>, vector<64x34xf32>
    %1 = vector.extract_strided_slice %0 {offsets = [0, 32], sizes = [64, 1], strides = [1, 1]} : vector<64x34xf32> to vector<64x1xf32>
    %2 = math.tanh %1 : vector<64x1xf32>
    %3 = vector.shape_cast %2 : vector<64x1xf32> to vector<64x1xf32>
    %4 = vector.broadcast %3 : vector<64x1xf32> to vector<64x34xf32>
    %5 = tpu.iota {dimensions = array<i32: 1>} : vector<64x33xi32>
    %c32_i32 = arith.constant 32 : i32
    %6 = vector.broadcast %c32_i32 : i32 to vector<64x33xi32>
    %7 = arith.cmpi eq, %5, %6 : vector<64x33xi32>
    %8 = arith.extui %7 : vector<64x33xi1> to vector<64x33xi32>
    %9 = arith.sitofp %8 : vector<64x33xi32> to vector<64x33xf32>
    %10 = arith.truncf %0 : vector<64x34xf32> to vector<64x34xbf16>
    %c0_1 = arith.constant 0 : index
    %c0_2 = arith.constant 0 : index
    %c0_3 = arith.constant 0 : index
    %11 = vector.load %arg2[%c0_1, %c0_2, %c0_3] : memref<2x34x128xbf16, #tpu.memory_space<vmem>>, vector<1x34x128xbf16>
    %12 = vector.shape_cast %11 : vector<1x34x128xbf16> to vector<34x128xbf16>
    %cst = arith.constant dense<0.000000e+00> : vector<64x128xf32>
    %13 = tpu.matmul %10, %12, %cst {dimension_numbers = #tpu.dot_dimension_numbers<[1], [0], [0], [1], [0, 0, 1, 1], [], []>} : vector<64x34xbf16>, vector<34x128xbf16>, vector<64x128xf32> -> vector<64x128xf32>
    %14 = math.tanh %13 : vector<64x128xf32>
    %15 = vector.extract_strided_slice %14 {offsets = [0, 0], sizes = [64, 33], strides = [1, 1]} : vector<64x128xf32> to vector<64x33xf32>
    %16 = arith.addf %15, %9 : vector<64x33xf32>
    %17 = arith.truncf %16 : vector<64x33xf32> to vector<64x33xbf16>
    %c0_4 = arith.constant 0 : index
    %c0_5 = arith.constant 0 : index
    %c0_6 = arith.constant 0 : index
    %18 = vector.load %arg3[%c0_4, %c0_5, %c0_6] : memref<2x33x128xbf16, #tpu.memory_space<vmem>>, vector<1x33x128xbf16>
    %19 = vector.shape_cast %18 : vector<1x33x128xbf16> to vector<33x128xbf16>
    %cst_7 = arith.constant dense<0.000000e+00> : vector<64x128xf32>
    %20 = tpu.matmul %17, %19, %cst_7 {dimension_numbers = #tpu.dot_dimension_numbers<[1], [0], [0], [1], [0, 0, 1, 1], [], []>} : vector<64x33xbf16>, vector<33x128xbf16>, vector<64x128xf32> -> vector<64x128xf32>
    %21 = math.tanh %20 : vector<64x128xf32>
    %22 = vector.extract_strided_slice %21 {offsets = [0, 0], sizes = [64, 34], strides = [1, 1]} : vector<64x128xf32> to vector<64x34xf32>
    %23 = arith.mulf %4, %22 : vector<64x34xf32>
    %24 = arith.addf %0, %23 : vector<64x34xf32>
    %25 = arith.truncf %24 : vector<64x34xf32> to vector<64x34xbf16>
    %c1 = arith.constant 1 : index
    %c0_8 = arith.constant 0 : index
    %c0_9 = arith.constant 0 : index
    %26 = vector.load %arg2[%c1, %c0_8, %c0_9] : memref<2x34x128xbf16, #tpu.memory_space<vmem>>, vector<1x34x128xbf16>
    %27 = vector.shape_cast %26 : vector<1x34x128xbf16> to vector<34x128xbf16>
    %cst_10 = arith.constant dense<0.000000e+00> : vector<64x128xf32>
    %28 = tpu.matmul %25, %27, %cst_10 {dimension_numbers = #tpu.dot_dimension_numbers<[1], [0], [0], [1], [0, 0, 1, 1], [], []>} : vector<64x34xbf16>, vector<34x128xbf16>, vector<64x128xf32> -> vector<64x128xf32>
    %29 = math.tanh %28 : vector<64x128xf32>
    %30 = vector.extract_strided_slice %29 {offsets = [0, 0], sizes = [64, 33], strides = [1, 1]} : vector<64x128xf32> to vector<64x33xf32>
    %31 = arith.addf %30, %9 : vector<64x33xf32>
    %32 = arith.truncf %31 : vector<64x33xf32> to vector<64x33xbf16>
    %c1_11 = arith.constant 1 : index
    %c0_12 = arith.constant 0 : index
    %c0_13 = arith.constant 0 : index
    %33 = vector.load %arg3[%c1_11, %c0_12, %c0_13] : memref<2x33x128xbf16, #tpu.memory_space<vmem>>, vector<1x33x128xbf16>
    %34 = vector.shape_cast %33 : vector<1x33x128xbf16> to vector<33x128xbf16>
    %cst_14 = arith.constant dense<0.000000e+00> : vector<64x128xf32>
    %35 = tpu.matmul %32, %34, %cst_14 {dimension_numbers = #tpu.dot_dimension_numbers<[1], [0], [0], [1], [0, 0, 1, 1], [], []>} : vector<64x33xbf16>, vector<33x128xbf16>, vector<64x128xf32> -> vector<64x128xf32>
    %36 = math.tanh %35 : vector<64x128xf32>
    %37 = vector.extract_strided_slice %36 {offsets = [0, 0], sizes = [64, 34], strides = [1, 1]} : vector<64x128xf32> to vector<64x34xf32>
    %38 = arith.mulf %4, %37 : vector<64x34xf32>
    %39 = arith.addf %24, %38 : vector<64x34xf32>
    %40 = vector.extract_strided_slice %39 {offsets = [0, 0], sizes = [64, 32], strides = [1, 1]} : vector<64x34xf32> to vector<64x32xf32>
    %c0_15 = arith.constant 0 : index
    %c0_16 = arith.constant 0 : index
    %41 = vector.load %arg4[%c0_15, %c0_16] : memref<64x32xf32, #tpu.memory_space<vmem>>, vector<64x32xf32>
    tpu.vector_store %arg4[%c0_15, %c0_16], %40 {strides = array<i32>} : memref<64x32xf32, #tpu.memory_space<vmem>>, vector<64x32xf32>,
    return
  }
  func.func @transform_0(%arg0: i32) -> (i32, i32) {
    %c0_i32 = arith.constant 0 : i32
    %c0_i32_0 = arith.constant 0 : i32
    return %arg0, %c0_i32 : i32, i32
  }
  func.func @transform_1(%arg0: i32) -> (i32, i32, i32) {
    %c0_i32 = arith.constant 0 : i32
    %c0_i32_0 = arith.constant 0 : i32
    %c0_i32_1 = arith.constant 0 : i32
    %c0_i32_2 = arith.constant 0 : i32
    return %c0_i32, %c0_i32_0, %c0_i32_1 : i32, i32, i32
  }
  func.func @transform_2(%arg0: i32) -> (i32, i32, i32) {
    %c0_i32 = arith.constant 0 : i32
    %c0_i32_0 = arith.constant 0 : i32
    %c0_i32_1 = arith.constant 0 : i32
    %c0_i32_2 = arith.constant 0 : i32
    return %c0_i32, %c0_i32_0, %c0_i32_1 : i32, i32, i32
  }
  func.func @transform_3(%arg0: i32) -> (i32, i32) {
    %c0_i32 = arith.constant 0 : i32
    %c0_i32_0 = arith.constant 0 : i32
    return %arg0, %c0_i32 : i32, i32
  }
}

</mosaic_0001>

<bundles_post_ra>
// kernel: tpu_custom_call.1
= control target key start
LH: loop header
LB: loop body
LE: loop exit
PB: predicated region body
PF: predicated region fallthrough
CT: control target
= control target key end

     0   :  { %vm100_vm0 = vcmask 277504   ;;  %vm113_vm1 = vcmask 1040384   ;;  %v814_v19 = vmov 0   ;;  %v815_v23 = vmov 32   ;;  %s1076_s1 = inlined_call_operand.vmem [shape: bf16[2,34,128], index: 1, kind: input, shape index: {}]   ;;  %s1077_s0 = inlined_call_operand.vmem [shape: f32[64,34], index: 0, kind: input, shape index: {}]   ;;  %s1078_s2 = inlined_call_operand.vmem [shape: bf16[2,33,128], index: 2, kind: input, shape index: {}]   ;;  %s1079_s3 = inlined_call_operand.vmem [shape: f32[64,32], index: 3, kind: output, shape index: {}]  }
   0x1   :  { %v722_v0 = vld [vmem:[%s1076_s1] sm:$0xff]   ;;  %v723_v1 = vld [vmem:[%s1076_s1 + $0x8] sm:$0xff]   ;;  %v724_v4 = vld [vmem:[%s1076_s1 + $0x10] ss:$0 sps:$4 sm:$0x11]   ;;  %v910_v20 = vsel %vm113_vm1, 65535, %v814_v19  ;;  %720 = vset.pattern.permute.xlu0 %v815_v23  ;;  %721 = vset.pattern.permute.xlu1 %v815_v23  ;;  %v71_v32 = vlaneseq }
   0x2   :  { %659 = vmatprep.subr.bf16.mxu0 %v722_v0  ;;  %v846_v2 = vld [vmem:[%s1077_s0] sm:$0xff]  ;;  %v851_v3 = vld [vmem:[%s1077_s0 + $0x8] sm:$0xff]  ;;  %v862_v6 = vld [vmem:[%s1077_s0 + $0x10] sm:$0xff]  ;;  %v115_v8 = vsel %vm113_vm1, %v724_v4, 0  ;;  %v816_v42 = vmov 0.0   ;;  %vm222_vm3 = vcmask 269312  }
   0x3   :  { %660 = vmatpush3.bf16.msra.mxu0 %v722_v0  ;;  %v76_v5 = vpack.c.bf16 %v851_v3, %v846_v2  ;;  %v867_v7 = vld [vmem:[%s1077_s0 + $0x18] sm:$0xff]  ;;  %v874_v9 = vld [vmem:[%s1077_s0 + $0x20] sm:$0xff]  ;;  %v879_v10 = vld [vmem:[%s1077_s0 + $0x28] sm:$0xff]  ;;  %734 = vtanh.f32 %v846_v2  ;;  %v72_v36 = vand.u32 127, %v71_v32  ;;  %vm579_vm4 = vcmask 261120  }
   0x4   :  { %661 = vmatprep.subr.bf16.mxu0 %v723_v1  ;;  %v77_v11 = vpack.c.bf16 %v867_v7, %v862_v6  ;;  %v78_v12 = vpack.c.bf16 %v879_v10, %v874_v9  ;;  %v890_v13 = vld [vmem:[%s1077_s0 + $0x30] sm:$0xff]  ;;  %v895_v14 = vld [vmem:[%s1077_s0 + $0x38] sm:$0xff]  ;;  %v725_v16 = vld [vmem:[%s1078_s2] sm:$0xff]   ;;  %736 = vtanh.f32 %v851_v3 }
   0x5   :  { %665 = vmatprep.mubr.msk.bf16.mxu0 %vm100_vm0, %v76_v5  ;;  %v79_v15 = vpack.c.bf16 %v895_v14, %v890_v13  ;;  %673 = vmatprep.subr.bf16.mxu1 %v725_v16  ;;  %v726_v17 = vld [vmem:[%s1078_s2 + $0x8] sm:$0xff]   ;;  %v727_v18 = vld [vmem:[%s1078_s2 + $0x10] ss:$0 sps:$4 sm:$0x11]   ;;  %738 = vtanh.f32 %v874_v9  ;;  %vm73_vm2 = vcmp.eq.s32.totalorder %v72_v36, 32  ;;  %v728_v63 = vld [vmem:[%s1076_s1 + $0x14] sm:$0xff]  }
   0x6   :  { %674 = vmatpush3.bf16.msra.mxu1 %v725_v16  ;;  %v238_v21 = vand.u32 %v727_v18, %v910_v20  ;;  %740 = vtanh.f32 %v862_v6  ;;  %v921_v43 = vsel %vm73_vm2, 1.0, %v816_v42  ;;  %v729_v0 = vld [vmem:[%s1076_s1 + $0x1c] sm:$0xff]  }
   0x7   :  { %662 = vmatpush3.bf16.msra.mxu0 %v723_v1  ;;  %675 = vmatprep.subr.bf16.mxu1 %v726_v17  ;;  %742 = vtanh.f32 %v890_v13  ;;  %v730_v1 = vld [vmem:[%s1076_s1 + $0x24] ss:$0 sps:$4 sm:$0x11]  }
   0x8   :  { %715 = vmatprep.subr.msk.bf16.mxu0 %vm113_vm1, %v724_v4  ;;  %744 = vtanh.f32 %v867_v7  ;;  %v367_v4 = vsel %vm113_vm1, %v730_v1, 0 }
   0x9   :  { %746 = vtanh.f32 %v879_v10 }
   0xa   :  { %676 = vmatpush3.bf16.msra.mxu1 %v726_v17  ;;  %748 = vtanh.f32 %v895_v14 }
   0xb   :  { %664 = vmatpush3.bf16.msra.mxu0 %v115_v8  ;;  %677 = vmatprep.subr.bf16.mxu1 %v238_v21 }
   0xc   :  { %687 = vmatprep.subr.bf16.mxu0 %v728_v63 }
   0xd   :  { %v735_v22 = vpop.eup %734 }
   0xe   :  { %666 = vmatmul.mubr.msk.bf16.vlgmr.msra.gmra.mrb[0].mxu0 %vm100_vm0, %v77_v11  ;;  %678 = vmatpush3.bf16.msra.mxu1 %v238_v21  ;;  %v737_v24 = vpop.eup %736 }
   0xf   :  { %669 = vmatprep.mubr.msk.bf16.mxu0 %vm100_vm0, %v78_v12  ;;  %33 = vperm.xlu0 %720, %v735_v22   ;;  %v739_v25 = vpop.eup %738 }
  0x10   :  { %v741_v26 = vpop.eup %740  ;;  %688 = vmatpush3.bf16.msra.mxu0 %v728_v63 }
  0x11   :  { %v743_v27 = vpop.eup %742  ;;  %43 = vperm.xlu1 %721, %v741_v26   ;;  %689 = vmatprep.subr.bf16.mxu0 %v729_v0 }
  0x12   :  { %v745_v28 = vpop.eup %744 }
  0x13   :  { %38 = vperm.xlu0 %720, %v737_v24   ;;  %v747_v29 = vpop.eup %746 }
  0x14   :  { %v749_v30 = vpop.eup %748  ;;  %690 = vmatpush3.bf16.msra.mxu0 %v729_v0 }
  0x15   :  { %48 = vperm.xlu1 %721, %v745_v28   ;;  %716 = vmatprep.subr.msk.bf16.mxu0 %vm113_vm1, %v730_v1 }
  0x16   :  { %670 = vmatmul.mubr.msk.bf16.gmra.mrb[4].mxu0 %vm100_vm0, %v79_v15 }
  0x17   :  { %53 = vperm.xlu0 %720, %v739_v25  }
  0x18   :  { %692 = vmatpush3.bf16.msra.mxu0 %v367_v4 }
  0x19   :  { %58 = vperm.xlu1 %721, %v747_v29  }
  0x1b   :  { %63 = vperm.xlu0 %720, %v743_v27  }
  0x1d   :  { %68 = vperm.xlu1 %721, %v749_v30  }
  0x8e   :  { %v946_v11 = vpop.permute.xlu0 %33 }
  0x90   :  { %v948_v15 = vpop.permute.xlu1 %43 }
  0x92   :  { %v950_v17 = vpop.permute.xlu0 %38 }
  0x94   :  { %v952_v19 = vpop.permute.xlu1 %48 }
  0x98   :  { %v959_v32 = vpop.permute.xlu1 %58 }
  0xe1   :  { %v667_v31 = vpop.f32.mrb[0].mxu0 }
  0xe2   :  { %750 = vtanh.f32 %v667_v31  ;;  %v151_v33 = vpop.f32.mrb[1].mxu0  ;;  %v957_v31 = vpop.permute.xlu0 %53 }
  0xe3   :  { %752 = vtanh.f32 %v151_v33  ;;  %v668_v34 = vpop.f32.mrb[2].mxu0 }
  0xe4   :  { %754 = vtanh.f32 %v668_v34  ;;  %v154_v35 = vpop.f32.mrb[3].mxu0 }
  0xe5   :  { %756 = vtanh.f32 %v154_v35 }
  0xe9   :  { %v671_v37 = vpop.f32.mrb[4].mxu0 }
  0xea   :  { %758 = vtanh.f32 %v671_v37  ;;  %v167_v38 = vpop.f32.mrb[5].mxu0 }
  0xeb   :  { %760 = vtanh.f32 %v167_v38  ;;  %v672_v39 = vpop.f32.mrb[6].mxu0 }
  0xec   :  { %v751_v40 = vpop.eup %750  ;;  %762 = vtanh.f32 %v672_v39  ;;  %v170_v41 = vpop.f32.mrb[7].mxu0 }
  0xed   :  { %v753_v44 = vpop.eup %752  ;;  %764 = vtanh.f32 %v170_v41  ;;  %v192_v47 = vadd.f32 %v751_v40, %v921_v43 }
  0xee   :  { %v755_v45 = vpop.eup %754  ;;  %v190_v49 = vadd.f32 %v753_v44, %v921_v43  ;;  %v980_v44 = vpop.permute.xlu1 %68 }
  0xef   :  { %v757_v46 = vpop.eup %756  ;;  %v193_v48 = vadd.f32 %v755_v45, %v921_v43 }
  0xf0   :  { %v191_v50 = vadd.f32 %v757_v46, %v921_v43 }
  0xf1   :  { %v199_v51 = vpack.c.bf16 %v193_v48, %v192_v47 }
  0xf2   :  { %v198_v52 = vpack.c.bf16 %v191_v50, %v190_v49 }
  0xf4   :  { %v759_v53 = vpop.eup %758  ;;  %679 = vmatprep.mubr.msk.bf16.mxu1 %vm222_vm3, %v198_v52 }
  0xf5   :  { %v761_v54 = vpop.eup %760  ;;  %680 = vmatmul.mubr.msk.bf16.vlgmr.msra.gmra.mrb[0].mxu1 %vm222_vm3, %v199_v51  ;;  %v196_v57 = vadd.f32 %v759_v53, %v921_v43 }
  0xf6   :  { %v763_v55 = vpop.eup %762  ;;  %v194_v59 = vadd.f32 %v761_v54, %v921_v43 }
  0xf7   :  { %v765_v56 = vpop.eup %764  ;;  %v197_v58 = vadd.f32 %v763_v55, %v921_v43 }
  0xf8   :  { %v195_v60 = vadd.f32 %v765_v56, %v921_v43 }
  0xf9   :  { %v201_v61 = vpack.c.bf16 %v197_v58, %v196_v57 }
  0xfa   :  { %v200_v62 = vpack.c.bf16 %v195_v60, %v194_v59 }
  0xfc   :  { %683 = vmatprep.mubr.msk.bf16.mxu1 %vm222_vm3, %v200_v62 }
  0xfd   :  { %684 = vmatmul.mubr.msk.bf16.gmra.mrb[4].mxu1 %vm222_vm3, %v201_v61 }
 0x1c8   :  { %v681_v5 = vpop.f32.mrb[0].mxu1 }
 0x1c9   :  { %766 = vtanh.f32 %v681_v5  ;;  %v274_v8 = vpop.f32.mrb[1].mxu1 }
 0x1ca   :  { %768 = vtanh.f32 %v274_v8  ;;  %v682_v12 = vpop.f32.mrb[2].mxu1 }
 0x1cb   :  { %770 = vtanh.f32 %v682_v12  ;;  %v277_v16 = vpop.f32.mrb[3].mxu1 }
 0x1cc   :  { %772 = vtanh.f32 %v277_v16 }
 0x1d0   :  { %v685_v18 = vpop.f32.mrb[4].mxu1 }
 0x1d1   :  { %774 = vtanh.f32 %v685_v18  ;;  %v290_v21 = vpop.f32.mrb[5].mxu1 }
 0x1d2   :  { %776 = vtanh.f32 %v290_v21  ;;  %v686_v22 = vpop.f32.mrb[6].mxu1 }
 0x1d3   :  { %v767_v23 = vpop.eup %766  ;;  %778 = vtanh.f32 %v686_v22  ;;  %v293_v24 = vpop.f32.mrb[7].mxu1 }
 0x1d4   :  { %v769_v25 = vpop.eup %768  ;;  %780 = vtanh.f32 %v293_v24  ;;  %v315_v29 = vmul.f32 %v767_v23, %v948_v15 }
 0x1d5   :  { %v771_v26 = vpop.eup %770  ;;  %v313_v27 = vmul.f32 %v769_v25, %v946_v11 }
 0x1d6   :  { %v773_v28 = vpop.eup %772  ;;  %v316_v30 = vmul.f32 %v771_v26, %v952_v19  ;;  %v972_v37 = vadd.f32 %v315_v29, %v862_v6 }
 0x1d7   :  { %v314_v33 = vmul.f32 %v773_v28, %v950_v17  ;;  %v966_v35 = vadd.f32 %v313_v27, %v846_v2 }
 0x1d8   :  { %v963_v34 = vadd.f32 %v316_v30, %v867_v7  ;;  %v978_v7 = vpop.permute.xlu0 %63 }
 0x1d9   :  { %v969_v36 = vadd.f32 %v314_v33, %v851_v3 }
 0x1da   :  { %v330_v41 = vpack.c.bf16 %v963_v34, %v972_v37 }
 0x1db   :  { %v775_v38 = vpop.eup %774  ;;  %v329_v39 = vpack.c.bf16 %v969_v36, %v966_v35 }
 0x1dc   :  { %v777_v40 = vpop.eup %776  ;;  %v319_v6 = vmul.f32 %v775_v38, %v978_v7 }
 0x1dd   :  { %v779_v42 = vpop.eup %778  ;;  %693 = vmatprep.mubr.msk.bf16.mxu0 %vm100_vm0, %v329_v39  ;;  %v317_v2 = vmul.f32 %v777_v40, %v957_v31 }
 0x1de   :  { %v781_v3 = vpop.eup %780  ;;  %v320_v45 = vmul.f32 %v779_v42, %v980_v44  ;;  %694 = vmatmul.mubr.msk.bf16.vlgmr.msra.gmra.mrb[8].mxu0 %vm100_vm0, %v330_v41  ;;  %v998_v50 = vadd.f32 %v319_v6, %v890_v13  ;;  %v733_v13 = vld [vmem:[%s1078_s2 + $0x24] ss:$0 sps:$4 sm:$0x11]  }
 0x1df   :  { %v318_v46 = vmul.f32 %v781_v3, %v959_v32  ;;  %v992_v48 = vadd.f32 %v317_v2, %v874_v9  ;;  %v731_v9 = vld [vmem:[%s1078_s2 + $0x14] sm:$0xff]  }
 0x1e0   :  { %v989_v47 = vadd.f32 %v320_v45, %v895_v14  ;;  %701 = vmatprep.subr.bf16.mxu1 %v731_v9  ;;  %v488_v14 = vand.u32 %v733_v13, %v910_v20 }
 0x1e1   :  { %v995_v49 = vadd.f32 %v318_v46, %v879_v10  ;;  %702 = vmatpush3.bf16.msra.mxu1 %v731_v9  ;;  %v732_v10 = vld [vmem:[%s1078_s2 + $0x1c] sm:$0xff]  }
 0x1e2   :  { %v332_v52 = vpack.c.bf16 %v989_v47, %v998_v50  ;;  %703 = vmatprep.subr.bf16.mxu1 %v732_v10 }
 0x1e3   :  { %v331_v51 = vpack.c.bf16 %v995_v49, %v992_v48 }
 0x1e5   :  { %697 = vmatprep.mubr.msk.bf16.mxu0 %vm100_vm0, %v331_v51  ;;  %704 = vmatpush3.bf16.msra.mxu1 %v732_v10 }
 0x1e6   :  { %698 = vmatmul.mubr.msk.bf16.gmra.mrb[12].mxu0 %vm100_vm0, %v332_v52  ;;  %705 = vmatprep.subr.bf16.mxu1 %v488_v14 }
 0x1e9   :  { %706 = vmatpush3.bf16.msra.mxu1 %v488_v14 }
 0x2b1   :  { %v695_v53 = vpop.f32.mrb[8].mxu0 }
 0x2b2   :  { %782 = vtanh.f32 %v695_v53  ;;  %v403_v54 = vpop.f32.mrb[9].mxu0 }
 0x2b3   :  { %784 = vtanh.f32 %v403_v54  ;;  %v696_v55 = vpop.f32.mrb[10].mxu0 }
 0x2b4   :  { %786 = vtanh.f32 %v696_v55  ;;  %v406_v56 = vpop.f32.mrb[11].mxu0 }
 0x2b5   :  { %788 = vtanh.f32 %v406_v56 }
 0x2b9   :  { %v699_v57 = vpop.f32.mrb[12].mxu0 }
 0x2ba   :  { %790 = vtanh.f32 %v699_v57  ;;  %v419_v58 = vpop.f32.mrb[13].mxu0 }
 0x2bb   :  { %792 = vtanh.f32 %v419_v58  ;;  %v700_v59 = vpop.f32.mrb[14].mxu0 }
 0x2bc   :  { %v783_v60 = vpop.eup %782  ;;  %794 = vtanh.f32 %v700_v59  ;;  %v422_v61 = vpop.f32.mrb[15].mxu0 }
 0x2bd   :  { %v785_v62 = vpop.eup %784  ;;  %796 = vtanh.f32 %v422_v61  ;;  %v444_v0 = vadd.f32 %v783_v60, %v921_v43 }
 0x2be   :  { %v787_v20 = vpop.eup %786  ;;  %v442_v4 = vadd.f32 %v785_v62, %v921_v43 }
 0x2bf   :  { %v789_v63 = vpop.eup %788  ;;  %v445_v1 = vadd.f32 %v787_v20, %v921_v43 }
 0x2c0   :  { %v443_v5 = vadd.f32 %v789_v63, %v921_v43 }
 0x2c1   :  { %v451_v8 = vpack.c.bf16 %v445_v1, %v444_v0 }
 0x2c2   :  { %v450_v12 = vpack.c.bf16 %v443_v5, %v442_v4 }
 0x2c4   :  { %v791_v16 = vpop.eup %790  ;;  %707 = vmatprep.mubr.msk.bf16.mxu1 %vm222_vm3, %v450_v12 }
 0x2c5   :  { %v793_v18 = vpop.eup %792  ;;  %708 = vmatmul.mubr.msk.bf16.vlgmr.msra.gmra.mrb[8].mxu1 %vm222_vm3, %v451_v8  ;;  %v448_v23 = vadd.f32 %v791_v16, %v921_v43 }
 0x2c6   :  { %v795_v21 = vpop.eup %794  ;;  %v446_v25 = vadd.f32 %v793_v18, %v921_v43 }
 0x2c7   :  { %v797_v22 = vpop.eup %796  ;;  %v449_v24 = vadd.f32 %v795_v21, %v921_v43 }
 0x2c8   :  { %v447_v26 = vadd.f32 %v797_v22, %v921_v43 }
 0x2c9   :  { %v453_v27 = vpack.c.bf16 %v449_v24, %v448_v23 }
 0x2ca   :  { %v452_v28 = vpack.c.bf16 %v447_v26, %v446_v25 }
 0x2cc   :  { %711 = vmatprep.mubr.msk.bf16.mxu1 %vm222_vm3, %v452_v28 }
 0x2cd   :  { %712 = vmatmul.mubr.msk.bf16.gmra.mrb[12].mxu1 %vm222_vm3, %v453_v27 }
 0x398   :  { %v709_v29 = vpop.f32.mrb[8].mxu1 }
 0x399   :  { %798 = vtanh.f32 %v709_v29  ;;  %v524_v30 = vpop.f32.mrb[9].mxu1 }
 0x39a   :  { %800 = vtanh.f32 %v524_v30  ;;  %v710_v33 = vpop.f32.mrb[10].mxu1 }
 0x39b   :  { %802 = vtanh.f32 %v710_v33  ;;  %v527_v38 = vpop.f32.mrb[11].mxu1 }
 0x39c   :  { %804 = vtanh.f32 %v527_v38 }
 0x3a0   :  { %v713_v39 = vpop.f32.mrb[12].mxu1 }
 0x3a1   :  { %806 = vtanh.f32 %v713_v39  ;;  %v540_v40 = vpop.f32.mrb[13].mxu1 }
 0x3a2   :  { %808 = vtanh.f32 %v540_v40  ;;  %v714_v41 = vpop.f32.mrb[14].mxu1 }
 0x3a3   :  { %v799_v43 = vpop.eup %798  ;;  %810 = vtanh.f32 %v714_v41  ;;  %v543_v42 = vpop.f32.mrb[15].mxu1 }
 0x3a4   :  { %v801_v2 = vpop.eup %800  ;;  %v565_v3 = vmul.f32 %v799_v43, %v948_v15  ;;  %812 = vtanh.f32 %v543_v42 }
 0x3a5   :  { %v803_v6 = vpop.eup %802  ;;  %v563_v45 = vmul.f32 %v801_v2, %v946_v11 }
 0x3a6   :  { %v805_v46 = vpop.eup %804  ;;  %v573_v51 = vadd.f32 %v565_v3, %v972_v37  ;;  %v566_v52 = vmul.f32 %v803_v6, %v952_v19 }
 0x3a7   :  { %v571_v9 = vadd.f32 %v563_v45, %v966_v35  ;;  %v564_v10 = vmul.f32 %v805_v46, %v950_v17 }
 0x3a8   :  { %582 = vst.msk [vmem:[%s1079_s3 + $0x10] sm:$0xff] %vm579_vm4, %v573_v51  ;;  %v574_v15 = vadd.f32 %v566_v52, %v963_v34 }
 0x3a9   :  { %580 = vst.msk [vmem:[%s1079_s3] sm:$0xff] %vm579_vm4, %v571_v9  ;;  %v572_v11 = vadd.f32 %v564_v10, %v969_v36 }
 0x3aa   :  { %583 = vst.msk [vmem:[%s1079_s3 + $0x18] sm:$0xff] %vm579_vm4, %v574_v15 }
 0x3ab   :  { %v807_v17 = vpop.eup %806  ;;  %581 = vst.msk [vmem:[%s1079_s3 + $0x8] sm:$0xff] %vm579_vm4, %v572_v11 }
 0x3ac   :  { %v809_v19 = vpop.eup %808  ;;  %v569_v34 = vmul.f32 %v807_v17, %v978_v7 }
 0x3ad   :  { %v811_v35 = vpop.eup %810  ;;  %v567_v37 = vmul.f32 %v809_v19, %v957_v31 }
 0x3ae   :  { %v813_v13 = vpop.eup %812  ;;  %v577_v36 = vadd.f32 %v569_v34, %v998_v50  ;;  %v570_v14 = vmul.f32 %v811_v35, %v980_v44 }
 0x3af   :  { %v575_v53 = vadd.f32 %v567_v37, %v992_v48  ;;  %v568_v54 = vmul.f32 %v813_v13, %v959_v32 }
 0x3b0   :  { %586 = vst.msk [vmem:[%s1079_s3 + $0x30] sm:$0xff] %vm579_vm4, %v577_v36  ;;  %v578_v55 = vadd.f32 %v570_v14, %v989_v47 }
 0x3b1   :  { %584 = vst.msk [vmem:[%s1079_s3 + $0x20] sm:$0xff] %vm579_vm4, %v575_v53  ;;  %v576_v31 = vadd.f32 %v568_v54, %v995_v49 }
 0x3b2   :  { %587 = vst.msk [vmem:[%s1079_s3 + $0x38] sm:$0xff] %vm579_vm4, %v578_v55 }
 0x3b3   :  { %585 = vst.msk [vmem:[%s1079_s3 + $0x28] sm:$0xff] %vm579_vm4, %v576_v31 }

</bundles_post_ra>
